<compile_context>
chip_gen: v7x
topology: tpu7x:2x2x1
jax: 0.10.0
libtpu: 0.0.40
codegen_flags: <defaults>
</compile_context>

<pallas_src>
import functools

import jax
import jax.numpy as jnp
from jax.experimental import pallas as pl
from jax.experimental.pallas import tpu as pltpu


def _round_up(x: int, m: int) -> int:
    return ((x + m - 1) // m) * m


def closed_loop_kernel(
    xt_ref,    # (TB, NXP)       padded state; lane nx carries a constant 1.0
    w1a_ref,   # (NXP, HP+NXP)   [w1 | A^T] with b1 / b3@B^T / lane-propagation folded in
    w2_ref,    # (HP, HP)        w2 with b2 folded into the h1 homogeneous row
    w3b_ref,   # (HP, NXP)       w3 @ B^T (controller output layer folded into dynamics)
    out_ref,   # (TB, NXP)
    *,
    num_steps: int,
    hp: int,
    interleave: int,
    unroll_threshold: int = 16,
):
    w1a = w1a_ref[...]
    w2 = w2_ref[...]
    w3b = w3b_ref[...]
    mm_dtype = w1a.dtype  # bf16 when use_bf16, else f32; accumulation is always f32

    def substep(xc):
        # One fused matmul yields both the first-layer pre-activation (b1 already folded
        # via the homogeneous lane) and x @ A^T (+ b3 @ B^T, hom lane self-propagated).
        t = jnp.dot(xc.astype(mm_dtype), w1a, preferred_element_type=jnp.float32)
        h1 = jnp.maximum(t[:, :hp], 0.0)         # hom lane of h1 is exactly 1.0
        x_a = t[:, hp:]
        h2 = jnp.maximum(
            jnp.dot(h1.astype(mm_dtype), w2, preferred_element_type=jnp.float32), 0.0
        )                                        # b2 folded via the h1 hom lane
        return x_a + jnp.dot(h2.astype(mm_dtype), w3b,
                             preferred_element_type=jnp.float32)

    def step(carry):
        # Independent batch sub-tiles: their matmul chains are independent, so the
        # scheduler can overlap one tile's MXU drain with the other's weight push.
        return tuple(substep(xc) for xc in carry)

    x = xt_ref[...]
    if interleave >= 2:
        rows = x.shape[0] // interleave
        carry = tuple(x[i * rows:(i + 1) * rows] for i in range(interleave))
    else:
        carry = (x,)

    if num_steps <= unroll_threshold:
        for _ in range(num_steps):          # small fixed trip count: fully unrolled
            carry = step(carry)
    else:
        carry = jax.lax.fori_loop(
            0, num_steps, lambda i, c: step(c), carry, unroll=min(8, num_steps))

    if interleave >= 2:
        rows = out_ref.shape[0] // interleave
        for i in range(interleave):
            out_ref[i * rows:(i + 1) * rows, :] = carry[i]
    else:
        out_ref[...] = carry[0]


def closed_loop_dynamics(xt, params, num_steps: int, *, use_bf16: bool = False):
    """Final state after `num_steps` of controller+dynamics (ClosedLoopDynamics.forward)."""
    w1, b1, w2, b2, w3, b3, a_t, b_t = params
    B, nx = xt.shape
    H = w1.shape[1]
    nu = w3.shape[1]
    assert w1.shape == (nx, H) and w2.shape == (H, H) and w3.shape == (H, nu)
    assert a_t.shape == (nx, nx) and b_t.shape == (nu, nx)

    f32 = jnp.float32
    wdtype = jnp.bfloat16 if use_bf16 else f32

    # Lane-dense padded widths, +1 homogeneous ("constant 1") lane each.
    NXP = _round_up(nx + 1, 128)
    HP = _round_up(H + 1, 128)
    hom_x = nx          # constant-1 lane index in the padded state
    hom_h = H           # constant-1 lane index in the padded hidden layer

    # Fold the controller output layer into the dynamics:  u @ B^T = h2 @ (w3 @ B^T) + b3 @ B^T
    w3b_small = w3.astype(f32) @ b_t.astype(f32)        # (H, nx)
    b3b_small = b3.astype(f32) @ b_t.astype(f32)        # (1, nx)

    # Fused [w1 | A^T], zero padded; biases live in the homogeneous row.
    w1a = jnp.zeros((NXP, HP + NXP), f32)
    w1a = w1a.at[:nx, :H].set(w1.astype(f32))
    w1a = w1a.at[hom_x, :H].set(b1.astype(f32).reshape(H))          # b1
    w1a = w1a.at[hom_x, hom_h].set(1.0)                             # route 1 -> h1 hom lane
    w1a = w1a.at[:nx, HP:HP + nx].set(a_t.astype(f32))
    w1a = w1a.at[hom_x, HP:HP + nx].set(b3b_small.reshape(nx))      # b3 @ B^T
    w1a = w1a.at[hom_x, HP + hom_x].set(1.0)                        # keep state hom lane == 1

    w2p = jnp.zeros((HP, HP), f32)
    w2p = w2p.at[:H, :H].set(w2.astype(f32))
    w2p = w2p.at[hom_h, :H].set(b2.astype(f32).reshape(H))          # b2

    w3b = jnp.zeros((HP, NXP), f32).at[:H, :nx].set(w3b_small)

    w1a = w1a.astype(wdtype)
    w2p = w2p.astype(wdtype)
    w3b = w3b.astype(wdtype)

    # Batch tiling: >=2 grid steps for v7x once B >= 16; 256-row tiles for big batches
    # (full v6e MXU M-pass); 2-way sub-tile interleave for mid-sized (latency-bound) tiles.
    Bp8 = _round_up(max(B, 1), 8)
    if Bp8 >= 512:
        TB = 256
    elif Bp8 >= 32:
        TB = _round_up(-(-Bp8 // 2), 16)
    else:
        TB = Bp8
    Bp = _round_up(Bp8, TB)
    grid = (Bp // TB,)
    interleave = 2 if (16 <= TB <= 128 and TB % 16 == 0) else 1

    x0 = jnp.zeros((Bp, NXP), f32)
    x0 = x0.at[:B, :nx].set(xt.astype(f32))
    x0 = x0.at[:, hom_x].set(1.0)                                   # homogeneous lane

    itemsize = 2 if use_bf16 else 4
    weight_bytes = (w1a.size + w2p.size + w3b.size) * itemsize
    io_bytes = 2 * (2 * TB * NXP * 4)  # double-buffered input + output tiles
    vmem_limit = int(min(max(2 * weight_bytes + 2 * io_bytes + (8 << 20), 32 << 20),
                         64 << 20))

    flops = 2 * Bp * num_steps * (NXP * (HP + NXP) + HP * HP + HP * NXP)
    bytes_accessed = 2 * Bp * NXP * 4 + weight_bytes
    cost = pl.CostEstimate(flops=int(flops), transcendentals=0,
                           bytes_accessed=int(bytes_accessed))

    kernel = functools.partial(closed_loop_kernel, num_steps=num_steps, hp=HP,
                               interleave=interleave)

    def const_spec(arr):
        return pl.BlockSpec(arr.shape, lambda i: (0, 0))

    out = pl.pallas_call(
        kernel,
        out_shape=jax.ShapeDtypeStruct((Bp, NXP), f32),
        grid=grid,
        in_specs=[
            pl.BlockSpec((TB, NXP), lambda i: (i, 0)),
            const_spec(w1a),
            const_spec(w2p),
            const_spec(w3b),
        ],
        out_specs=pl.BlockSpec((TB, NXP), lambda i: (i, 0)),
        compiler_params=pltpu.CompilerParams(
            dimension_semantics=("parallel",),
            vmem_limit_bytes=vmem_limit,
        ),
        cost_estimate=cost,
    )(x0, w1a, w2p, w3b)

    return out[:B, :nx]


def reference_closed_loop(xt, params, num_steps: int):
    """Pure-JAX reference mirroring the PyTorch forward pass (f32-exact matmuls)."""
    w1, b1, w2, b2, w3, b3, a_t, b_t = params
    prec = jax.lax.Precision.HIGHEST
    x = xt
    for _ in range(num_steps):
        h1 = jnp.maximum(jnp.dot(x, w1, precision=prec) + b1, 0.0)
        h2 = jnp.maximum(jnp.dot(h1, w2, precision=prec) + b2, 0.0)
        u = jnp.dot(h2, w3, precision=prec) + b3
        x = jnp.dot(x, a_t, precision=prec) + jnp.dot(u, b_t, precision=prec)
    return x


if __name__ == "__main__":
    NX, NU, HIDDEN = 2, 1, 32

    key = jax.random.PRNGKey(0)
    k1, k2, k3, k4, k5, k6, kx1, kx2 = jax.random.split(key, 8)

    # Controller MLP parameters (deterministic init).
    w1 = 0.1 * jax.random.normal(k1, (NX, HIDDEN), dtype=jnp.float32)
    b1 = 0.1 * jax.random.normal(k2, (1, HIDDEN), dtype=jnp.float32)
    w2 = 0.1 * jax.random.normal(k3, (HIDDEN, HIDDEN), dtype=jnp.float32)
    b2 = 0.1 * jax.random.normal(k4, (1, HIDDEN), dtype=jnp.float32)
    w3 = 0.1 * jax.random.normal(k5, (HIDDEN, NU), dtype=jnp.float32)
    b3 = 0.1 * jax.random.normal(k6, (1, NU), dtype=jnp.float32)

    # Test 1: double-integrator dynamics, short rollout, small batch (unrolled path).
    dt = 1.0
    A = jnp.array([[1.0, dt], [0.0, 1.0]], dtype=jnp.float32)
    Bm = jnp.array([[0.5 * dt * dt], [dt]], dtype=jnp.float32)
    params_di = (w1, b1, w2, b2, w3, b3, A.T, Bm.T)

    xt1 = jax.random.normal(kx1, (8, NX), dtype=jnp.float32)
    out1 = jax.block_until_ready(closed_loop_dynamics(xt1, params_di, 3))
    ref1 = reference_closed_loop(xt1, params_di, 3)
    assert out1.shape == (8, NX)
    assert jnp.allclose(out1, ref1, atol=1e-4, rtol=1e-4), (out1, ref1)

    # Test 2: stable dynamics, long rollout, larger batch
    # (exercises fori_loop path, batch grid of 2, and 2-way sub-tile interleave).
    A2 = jnp.array([[0.90, 0.20], [0.00, 0.85]], dtype=jnp.float32)
    B2 = jnp.array([[0.10], [0.20]], dtype=jnp.float32)
    params_st = (w1, b1, w2, b2, w3, b3, A2.T, B2.T)

    xt2 = jax.random.normal(kx2, (40, NX), dtype=jnp.float32)
    out2 = jax.block_until_ready(closed_loop_dynamics(xt2, params_st, 24))
    ref2 = reference_closed_loop(xt2, params_st, 24)
    assert out2.shape == (40, NX)
    assert jnp.allclose(out2, ref2, atol=1e-3, rtol=1e-3), (out2, ref2)

    # Test 3: optional bf16 matmul operands (f32 accumulation), loose tolerance.
    out3 = jax.block_until_ready(
        closed_loop_dynamics(xt1, params_st, 5, use_bf16=True))
    ref3 = reference_closed_loop(xt1, params_st, 5)
    assert jnp.allclose(out3, ref3, atol=1e-1, rtol=1e-1), (out3, ref3)

    print("KERNEL_OK")
</pallas_src>

<mosaic_0001>
module attributes {stable_mosaic.version = 11 : i64} {
  func.func @closed_loop_kernel(%arg0: i32, %arg1: memref<8x128xf32, #tpu.memory_space<vmem>>, %arg2: memref<128x256xf32, #tpu.memory_space<vmem>>, %arg3: memref<128x128xf32, #tpu.memory_space<vmem>>, %arg4: memref<128x128xf32, #tpu.memory_space<vmem>>, %arg5: memref<8x128xf32, #tpu.memory_space<vmem>>) attributes {dimension_semantics = [#tpu.dimension_semantics<parallel>], iteration_bounds = array<i64: 1>, scalar_prefetch = 0 : i64, scratch_operands = 0 : i64, tpu.core_type = #tpu.core_type<tc>, window_params = [{transform_indices = @transform_0, window_bounds = array<i64: 8, 128>}, {pipeline_mode = #tpu.pipeline_mode<synchronous>, transform_indices = @transform_1, window_bounds = array<i64: 128, 256>}, {pipeline_mode = #tpu.pipeline_mode<synchronous>, transform_indices = @transform_2, window_bounds = array<i64: 128, 128>}, {pipeline_mode = #tpu.pipeline_mode<synchronous>, transform_indices = @transform_3, window_bounds = array<i64: 128, 128>}, {transform_indices = @transform_4, window_bounds = array<i64: 8, 128>}]} {
    %c0 = arith.constant 0 : index
    %c0_0 = arith.constant 0 : index
    %0 = vector.load %arg2[%c0, %c0_0] : memref<128x256xf32, #tpu.memory_space<vmem>>, vector<128x256xf32>
    %c0_1 = arith.constant 0 : index
    %c0_2 = arith.constant 0 : index
    %1 = vector.load %arg3[%c0_1, %c0_2] : memref<128x128xf32, #tpu.memory_space<vmem>>, vector<128x128xf32>
    %c0_3 = arith.constant 0 : index
    %c0_4 = arith.constant 0 : index
    %2 = vector.load %arg4[%c0_3, %c0_4] : memref<128x128xf32, #tpu.memory_space<vmem>>, vector<128x128xf32>
    %c0_5 = arith.constant 0 : index
    %c0_6 = arith.constant 0 : index
    %3 = vector.load %arg1[%c0_5, %c0_6] : memref<8x128xf32, #tpu.memory_space<vmem>>, vector<8x128xf32>
    %cst = arith.constant dense<0.000000e+00> : vector<8x256xf32>
    %4 = tpu.matmul %3, %0, %cst {dimension_numbers = #tpu.dot_dimension_numbers<[1], [0], [0], [1], [0, 0, 1, 1], [], []>} : vector<8x128xf32>, vector<128x256xf32>, vector<8x256xf32> -> vector<8x256xf32>
    %5 = vector.extract_strided_slice %4 {offsets = [0, 0], sizes = [8, 128], strides = [1, 1]} : vector<8x256xf32> to vector<8x128xf32>
    %cst_7 = arith.constant 0.000000e+00 : f32
    %6 = vector.broadcast %cst_7 : f32 to vector<8x128xf32>
    %7 = arith.maximumf %5, %6 : vector<8x128xf32>
    %8 = vector.extract_strided_slice %4 {offsets = [0, 128], sizes = [8, 128], strides = [1, 1]} : vector<8x256xf32> to vector<8x128xf32>
    %cst_8 = arith.constant dense<0.000000e+00> : vector<8x128xf32>
    %9 = tpu.matmul %7, %1, %cst_8 {dimension_numbers = #tpu.dot_dimension_numbers<[1], [0], [0], [1], [0, 0, 1, 1], [], []>} : vector<8x128xf32>, vector<128x128xf32>, vector<8x128xf32> -> vector<8x128xf32>
    %cst_9 = arith.constant 0.000000e+00 : f32
    %10 = vector.broadcast %cst_9 : f32 to vector<8x128xf32>
    %11 = arith.maximumf %9, %10 : vector<8x128xf32>
    %cst_10 = arith.constant dense<0.000000e+00> : vector<8x128xf32>
    %12 = tpu.matmul %11, %2, %cst_10 {dimension_numbers = #tpu.dot_dimension_numbers<[1], [0], [0], [1], [0, 0, 1, 1], [], []>} : vector<8x128xf32>, vector<128x128xf32>, vector<8x128xf32> -> vector<8x128xf32>
    %13 = arith.addf %8, %12 : vector<8x128xf32>
    %cst_11 = arith.constant dense<0.000000e+00> : vector<8x256xf32>
    %14 = tpu.matmul %13, %0, %cst_11 {dimension_numbers = #tpu.dot_dimension_numbers<[1], [0], [0], [1], [0, 0, 1, 1], [], []>} : vector<8x128xf32>, vector<128x256xf32>, vector<8x256xf32> -> vector<8x256xf32>
    %15 = vector.extract_strided_slice %14 {offsets = [0, 0], sizes = [8, 128], strides = [1, 1]} : vector<8x256xf32> to vector<8x128xf32>
    %cst_12 = arith.constant 0.000000e+00 : f32
    %16 = vector.broadcast %cst_12 : f32 to vector<8x128xf32>
    %17 = arith.maximumf %15, %16 : vector<8x128xf32>
    %18 = vector.extract_strided_slice %14 {offsets = [0, 128], sizes = [8, 128], strides = [1, 1]} : vector<8x256xf32> to vector<8x128xf32>
    %cst_13 = arith.constant dense<0.000000e+00> : vector<8x128xf32>
    %19 = tpu.matmul %17, %1, %cst_13 {dimension_numbers = #tpu.dot_dimension_numbers<[1], [0], [0], [1], [0, 0, 1, 1], [], []>} : vector<8x128xf32>, vector<128x128xf32>, vector<8x128xf32> -> vector<8x128xf32>
    %cst_14 = arith.constant 0.000000e+00 : f32
    %20 = vector.broadcast %cst_14 : f32 to vector<8x128xf32>
    %21 = arith.maximumf %19, %20 : vector<8x128xf32>
    %cst_15 = arith.constant dense<0.000000e+00> : vector<8x128xf32>
    %22 = tpu.matmul %21, %2, %cst_15 {dimension_numbers = #tpu.dot_dimension_numbers<[1], [0], [0], [1], [0, 0, 1, 1], [], []>} : vector<8x128xf32>, vector<128x128xf32>, vector<8x128xf32> -> vector<8x128xf32>
    %23 = arith.addf %18, %22 : vector<8x128xf32>
    %cst_16 = arith.constant dense<0.000000e+00> : vector<8x256xf32>
    %24 = tpu.matmul %23, %0, %cst_16 {dimension_numbers = #tpu.dot_dimension_numbers<[1], [0], [0], [1], [0, 0, 1, 1], [], []>} : vector<8x128xf32>, vector<128x256xf32>, vector<8x256xf32> -> vector<8x256xf32>
    %25 = vector.extract_strided_slice %24 {offsets = [0, 0], sizes = [8, 128], strides = [1, 1]} : vector<8x256xf32> to vector<8x128xf32>
    %cst_17 = arith.constant 0.000000e+00 : f32
    %26 = vector.broadcast %cst_17 : f32 to vector<8x128xf32>
    %27 = arith.maximumf %25, %26 : vector<8x128xf32>
    %28 = vector.extract_strided_slice %24 {offsets = [0, 128], sizes = [8, 128], strides = [1, 1]} : vector<8x256xf32> to vector<8x128xf32>
    %cst_18 = arith.constant dense<0.000000e+00> : vector<8x128xf32>
    %29 = tpu.matmul %27, %1, %cst_18 {dimension_numbers = #tpu.dot_dimension_numbers<[1], [0], [0], [1], [0, 0, 1, 1], [], []>} : vector<8x128xf32>, vector<128x128xf32>, vector<8x128xf32> -> vector<8x128xf32>
    %cst_19 = arith.constant 0.000000e+00 : f32
    %30 = vector.broadcast %cst_19 : f32 to vector<8x128xf32>
    %31 = arith.maximumf %29, %30 : vector<8x128xf32>
    %cst_20 = arith.constant dense<0.000000e+00> : vector<8x128xf32>
    %32 = tpu.matmul %31, %2, %cst_20 {dimension_numbers = #tpu.dot_dimension_numbers<[1], [0], [0], [1], [0, 0, 1, 1], [], []>} : vector<8x128xf32>, vector<128x128xf32>, vector<8x128xf32> -> vector<8x128xf32>
    %33 = arith.addf %28, %32 : vector<8x128xf32>
    %c0_21 = arith.constant 0 : index
    %c0_22 = arith.constant 0 : index
    %34 = vector.load %arg5[%c0_21, %c0_22] : memref<8x128xf32, #tpu.memory_space<vmem>>, vector<8x128xf32>
    tpu.vector_store %arg5[%c0_21, %c0_22], %33 {strides = array<i32>} : memref<8x128xf32, #tpu.memory_space<vmem>>, vector<8x128xf32>,
    return
  }
  func.func @transform_0(%arg0: i32) -> (i32, i32) {
    %c0_i32 = arith.constant 0 : i32
    %c0_i32_0 = arith.constant 0 : i32
    return %arg0, %c0_i32 : i32, i32
  }
  func.func @transform_1(%arg0: i32) -> (i32, i32) {
    %c0_i32 = arith.constant 0 : i32
    %c0_i32_0 = arith.constant 0 : i32
    %c0_i32_1 = arith.constant 0 : i32
    return %c0_i32, %c0_i32_0 : i32, i32
  }
  func.func @transform_2(%arg0: i32) -> (i32, i32) {
    %c0_i32 = arith.constant 0 : i32
    %c0_i32_0 = arith.constant 0 : i32
    %c0_i32_1 = arith.constant 0 : i32
    return %c0_i32, %c0_i32_0 : i32, i32
  }
  func.func @transform_3(%arg0: i32) -> (i32, i32) {
    %c0_i32 = arith.constant 0 : i32
    %c0_i32_0 = arith.constant 0 : i32
    %c0_i32_1 = arith.constant 0 : i32
    return %c0_i32, %c0_i32_0 : i32, i32
  }
  func.func @transform_4(%arg0: i32) -> (i32, i32) {
    %c0_i32 = arith.constant 0 : i32
    %c0_i32_0 = arith.constant 0 : i32
    return %arg0, %c0_i32 : i32, i32
  }
}

</mosaic_0001>

<bundles_post_ra>
// kernel: tpu_custom_call.1
= control target key start
LH: loop header
LB: loop body
LE: loop exit
PB: predicated region body
PF: predicated region fallthrough
CT: control target
= control target key end

     0   :  { %9 = vsyncpa [#allocation3], 0  ;;  %s1798_s0 = inlined_call_operand.hbm [shape: f32[8,128], index: 0, kind: input, shape index: {}]   ;;  %s1799_s1 = inlined_call_operand.hbm [shape: f32[128,256], index: 1, kind: input, shape index: {}]   ;;  %s1800_s2 = inlined_call_operand.hbm [shape: f32[128,128], index: 2, kind: input, shape index: {}]   ;;  %s1801_s3 = inlined_call_operand.hbm [shape: f32[128,128], index: 3, kind: input, shape index: {}]   ;;  %s1802_s4 = inlined_call_operand.hbm [shape: f32[8,128], index: 4, kind: output, shape index: {}]  }
   0x1   :  { %10 = vsyncpa [#allocation6], 0 }
   0x2   :  { %11 = vsyncpa [#allocation9], 0 }
   0x3   :  { %12 = vsyncpa [#allocation4], 0  ;;  %s1478_s15 = smov [#allocation5]   ;;  %s1360_s19 = scalar_lea.hbm %s1799_s1, 4096 }
   0x4   :  { %s28_s16 = sshll.u32 %s1478_s15, 4  ;;  %p1361_p0 = scmp.ne.s32.totalorder %s1799_s1, %s1360_s19  ;;  %s29_s16 = int_to_ptr.vmem [resolvable:$true] %s28_s16 }
   0x5   :  { %p1364_p1 = scmp.lt.u32.totalorder %s1360_s19, %s1799_s1 }
   0x7   :  { %p1366_p2 = pnand %p1364_p1, %p1361_p0 }
   0x9   :  { %1369 = shalt.err (!%p1366_p2)
}
   0xa   :  { %s1370_s24 = scalar_lea.vmem %s29_s16, 4096  ;;  %p1375_p4 = scmp.lt.s32.totalorder %s29_s16, %s29_s16 }
   0xb   :  { %p1371_p3 = scmp.ne.s32.totalorder %s29_s16, %s1370_s24  ;;  %p1376_p5 = scmp.lt.s32.totalorder %s1370_s24, %s1370_s24 }
   0xd   :  { %p1377_p6 = por %p1376_p5, %p1375_p4 }
   0xf   :  { %p1378_p7 = pnand %p1377_p6, %p1371_p3 }
  0x11   :  { %1381 = shalt.err (!%p1378_p7)
}
  0x12   :  { %s1479_s25 = smov 256   ;;  %s1480_s26 = smov 16  }
  0x13   :  { %34 = dma.hbm_to_vmem [thread:$0]  %s1799_s1, 4096, %s29_s16, [#allocation6], %s1479_s25, %s1479_s25, %s1480_s26  }
  0x14   :  { %s1481_s29 = smov [#allocation2]   ;;  %s1482_s5 = smov [#allocation7]  }
  0x15   :  { %s19_s30 = sshll.u32 %s1481_s29, 4  ;;  %s40_s6 = sshll.u32 %s1482_s5, 4  ;;  %s20_s30 = int_to_ptr.vmem [resolvable:$true] %s19_s30  ;;  %s41_s6 = int_to_ptr.vmem [resolvable:$true] %s40_s6 }
  0x16   :  { %s1382_s9 = scalar_lea.hbm %s1798_s0, 128 }
  0x17   :  { %p1383_p8 = scmp.ne.s32.totalorder %s1798_s0, %s1382_s9  ;;  %p1386_p9 = scmp.lt.u32.totalorder %s1382_s9, %s1798_s0 }
  0x19   :  { %p1388_p10 = pnand %p1386_p9, %p1383_p8 }
  0x1b   :  { %1391 = shalt.err (!%p1388_p10)
}
  0x1c   :  { %s1392_s1 = scalar_lea.vmem %s20_s30, 128  ;;  %p1397_p12 = scmp.lt.s32.totalorder %s20_s30, %s20_s30 }
  0x1d   :  { %p1393_p11 = scmp.ne.s32.totalorder %s20_s30, %s1392_s1  ;;  %p1398_p13 = scmp.lt.s32.totalorder %s1392_s1, %s1392_s1 }
  0x1f   :  { %p1399_p0 = por %p1398_p13, %p1397_p12 }
  0x21   :  { %p1400_p1 = pnand %p1399_p0, %p1393_p11 }
  0x23   :  { %1403 = shalt.err (!%p1400_p1)
}
  0x24   :  { %22 = dma.hbm_to_vmem [thread:$0]  %s1798_s0, 128, %s20_s30, [#allocation3]  }
  0x25   :  { %s1404_s18 = scalar_lea.hbm %s1800_s2, 2048 }
  0x26   :  { %p1405_p2 = scmp.ne.s32.totalorder %s1800_s2, %s1404_s18  ;;  %p1408_p3 = scmp.lt.u32.totalorder %s1404_s18, %s1800_s2 }
  0x28   :  { %p1410_p4 = pnand %p1408_p3, %p1405_p2 }
  0x2a   :  { %1413 = shalt.err (!%p1410_p4)
}
  0x2b   :  { %s1414_s23 = scalar_lea.vmem %s41_s6, 2048  ;;  %p1419_p6 = scmp.lt.s32.totalorder %s41_s6, %s41_s6 }
  0x2c   :  { %p1415_p5 = scmp.ne.s32.totalorder %s41_s6, %s1414_s23  ;;  %p1420_p7 = scmp.lt.s32.totalorder %s1414_s23, %s1414_s23 }
  0x2e   :  { %p1421_p8 = por %p1420_p7, %p1419_p6 }
  0x30   :  { %p1422_p9 = pnand %p1421_p8, %p1415_p5 }
  0x32   :  { %1425 = shalt.err (!%p1422_p9)
}
  0x33   :  { %s1483_s0 = smov 128   ;;  %s1484_s24 = smov 8  }
  0x34   :  { %46 = dma.hbm_to_vmem [thread:$0]  %s1800_s2, 2048, %s41_s6, [#allocation6], %s1483_s0, %s1483_s0, %s1484_s24  }
  0x35   :  { %s1485_s27 = smov [#allocation8]   ;;  %s1426_s5 = scalar_lea.hbm %s1801_s3, 2048 }
  0x36   :  { %s52_s28 = sshll.u32 %s1485_s27, 4  ;;  %p1427_p10 = scmp.ne.s32.totalorder %s1801_s3, %s1426_s5  ;;  %s53_s28 = int_to_ptr.vmem [resolvable:$true] %s52_s28 }
  0x37   :  { %p1430_p11 = scmp.lt.u32.totalorder %s1426_s5, %s1801_s3 }
  0x39   :  { %p1432_p12 = pnand %p1430_p11, %p1427_p10 }
  0x3b   :  { %1435 = shalt.err (!%p1432_p12)
}
  0x3c   :  { %s1436_s11 = scalar_lea.vmem %s53_s28, 2048  ;;  %p1441_p0 = scmp.lt.s32.totalorder %s53_s28, %s53_s28 }
  0x3d   :  { %p1437_p13 = scmp.ne.s32.totalorder %s53_s28, %s1436_s11  ;;  %p1442_p1 = scmp.lt.s32.totalorder %s1436_s11, %s1436_s11 }
  0x3f   :  { %p1443_p2 = por %p1442_p1, %p1441_p0 }
  0x41   :  { %p1444_p3 = pnand %p1443_p2, %p1437_p13 }
  0x43   :  { %1447 = shalt.err (!%p1444_p3)
}
  0x44   :  { %58 = dma.hbm_to_vmem [thread:$0]  %s1801_s3, 2048, %s53_s28, [#allocation9], %s1483_s0, %s1483_s0, %s1484_s24  }
  0x45   :  { %1470 = dma.done.wait [#allocation3], 128  }
  0x46   :  { %1471 = vsyncadd [#allocation3], 4294967168 }
  0x47   :  { %1472 = dma.done.wait [#allocation6], 6144  }
  0x48   :  { %1473 = vsyncadd [#allocation6], 4294961152 }
  0x49   :  { %1474 = dma.done.wait [#allocation9], 2048  }
  0x4a   :  { %1475 = vsyncadd [#allocation9], 4294965248  ;;  %v1486_v0 = vmov 0.0   ;;  %v1487_v1 = vmov 0.0|0.0   ;;  %v72_v2 = vld [vmem:[#allocation5 + $0x8] sm:$0xff]  ;;  %v74_v3 = vld [vmem:[#allocation5 + $0x18] sm:$0xff] }
  0x4b   :  { %200 = vmatprep.mubr.f32.mxu0 %v1486_v0  ;;  %1140 = vmatprep.subr.bf16.mxu1 %v1487_v1  ;;  %v71_v4 = vld [vmem:[#allocation5] sm:$0xff]  ;;  %v1565_v5 = vpack.c.bf16 %v74_v3, %v72_v2  ;;  %v73_v6 = vld [vmem:[#allocation5 + $0x10] sm:$0xff]  ;;  %v76_v7 = vld [vmem:[#allocation5 + $0x28] sm:$0xff]  ;;  %vm1488_vm0 = vmmov 0   ;;  %s1489_s3 = smov [#allocation10]  }
  0x4c   :  { %v78_v8 = vld [vmem:[#allocation5 + $0x38] sm:$0xff]  ;;  %v1567_v9 = vpack.c.bf16 %v73_v6, %v71_v4  ;;  %v75_v11 = vld [vmem:[#allocation5 + $0x20] sm:$0xff]  ;;  %v77_v12 = vld [vmem:[#allocation5 + $0x30] sm:$0xff]  ;;  %930 = vmatprep.mubr.msk.f32.mxu1 %vm1488_vm0, %v1486_v0  ;;  %s785_s12 = sshll.u32 %s1489_s3, 4  ;;  %s786_s12 = int_to_ptr.vmem [resolvable:$true] %s785_s12 }
  0x4d   :  { %v1569_v10 = vpack.c.bf16 %v78_v8, %v76_v7  ;;  %v80_v13 = vld [vmem:[#allocation5 + $0x48] sm:$0xff]  ;;  %1109 = vmatprep.subr.bf16.mxu0 %v1565_v5  ;;  %v82_v14 = vld [vmem:[#allocation5 + $0x58] sm:$0xff]  ;;  %v1573_v15 = vpack.c.bf16 %v77_v12, %v75_v11  ;;  %v79_v17 = vld [vmem:[#allocation5 + $0x40] sm:$0xff]  ;;  %s1448_s13 = scalar_lea.vmem %s786_s12, 128  ;;  %p1453_p5 = scmp.lt.s32.totalorder %s786_s12, %s786_s12 }
  0x4e   :  { %1111 = vmatpush1.bf16.msra.mxu0 %v1567_v9  ;;  %v1576_v16 = vpack.c.bf16 %v82_v14, %v80_v13  ;;  %v81_v18 = vld [vmem:[#allocation5 + $0x50] sm:$0xff]  ;;  %v84_v19 = vld [vmem:[#allocation5 + $0x68] sm:$0xff]  ;;  %v86_v20 = vld [vmem:[#allocation5 + $0x78] sm:$0xff]  ;;  %p1449_p4 = scmp.ne.s32.totalorder %s786_s12, %s1448_s13  ;;  %p1454_p6 = scmp.lt.s32.totalorder %s1448_s13, %s1448_s13 }
  0x4f   :  { %1113 = vmatprep.subr.bf16.mxu0 %v1569_v10  ;;  %v1579_v21 = vpack.c.bf16 %v81_v18, %v79_v17  ;;  %v1582_v22 = vpack.c.bf16 %v86_v20, %v84_v19  ;;  %v83_v23 = vld [vmem:[#allocation5 + $0x60] sm:$0xff]  ;;  %v85_v24 = vld [vmem:[#allocation5 + $0x70] sm:$0xff]  ;;  %v88_v25 = vld [vmem:[#allocation5 + $0x88] sm:$0xff] }
  0x50   :  { %v90_v26 = vld [vmem:[#allocation5 + $0x98] sm:$0xff]  ;;  %v103_v27 = vld [vmem:[#allocation7] sm:$0xff]  ;;  %v104_v28 = vld [vmem:[#allocation7 + $0x8] sm:$0xff]  ;;  %v1585_v30 = vpack.c.bf16 %v85_v24, %v83_v23  ;;  %p1455_p7 = por %p1454_p6, %p1453_p5 }
  0x51   :  { %v105_v29 = vld [vmem:[#allocation7 + $0x10] sm:$0xff]  ;;  %v1587_v31 = vpack.c.bf16 %v104_v28, %v103_v27  ;;  %v106_v32 = vld [vmem:[#allocation7 + $0x18] sm:$0xff]  ;;  %v1590_v33 = vpack.c.bf16 %v90_v26, %v88_v25  ;;  %v87_v34 = vld [vmem:[#allocation5 + $0x80] sm:$0xff] }
  0x52   :  { %1115 = vmatpush1.bf16.msra.mxu0 %v1573_v15  ;;  %v89_v35 = vld [vmem:[#allocation5 + $0x90] sm:$0xff]  ;;  %v92_v36 = vld [vmem:[#allocation5 + $0xa8] sm:$0xff]  ;;  %v94_v37 = vld [vmem:[#allocation5 + $0xb8] sm:$0xff]  ;;  %v1593_v38 = vpack.c.bf16 %v106_v32, %v105_v29  ;;  %p1456_p8 = pnand %p1455_p7, %p1449_p4 }
  0x53   :  { %1117 = vmatprep.subr.bf16.mxu0 %v1576_v16  ;;  %1142 = vmatpush3.bf16.msra.mxu1 %v1587_v31  ;;  %v107_v39 = vld [vmem:[#allocation7 + $0x20] sm:$0xff]  ;;  %v108_v40 = vld [vmem:[#allocation7 + $0x28] sm:$0xff]  ;;  %v1597_v41 = vpack.c.bf16 %v89_v35, %v87_v34  ;;  %v1600_v42 = vpack.c.bf16 %v94_v37, %v92_v36  ;;  %v93_v44 = vld [vmem:[#allocation5 + $0xb0] sm:$0xff] }
  0x54   :  { %1143 = vmatprep.subr.bf16.mxu1 %v1487_v1  ;;  %v91_v43 = vld [vmem:[#allocation5 + $0xa0] sm:$0xff]  ;;  %v96_v45 = vld [vmem:[#allocation5 + $0xc8] sm:$0xff]  ;;  %v98_v46 = vld [vmem:[#allocation5 + $0xd8] sm:$0xff]  ;;  %v1603_v47 = vpack.c.bf16 %v108_v40, %v107_v39 }
  0x55   :  { %v109_v48 = vld [vmem:[#allocation7 + $0x30] sm:$0xff]  ;;  %v110_v49 = vld [vmem:[#allocation7 + $0x38] sm:$0xff]  ;;  %v1607_v50 = vpack.c.bf16 %v93_v44, %v91_v43  ;;  %v1610_v51 = vpack.c.bf16 %v98_v46, %v96_v45  ;;  %v95_v52 = vld [vmem:[#allocation5 + $0xc0] sm:$0xff] }
  0x56   :  { %1119 = vmatpush1.bf16.msra.mxu0 %v1579_v21  ;;  %v97_v53 = vld [vmem:[#allocation5 + $0xd0] sm:$0xff]  ;;  %v100_v54 = vld [vmem:[#allocation5 + $0xe8] sm:$0xff]  ;;  %v102_v55 = vld [vmem:[#allocation5 + $0xf8] sm:$0xff]  ;;  %v1613_v56 = vpack.c.bf16 %v110_v49, %v109_v48 }
  0x57   :  { %1121 = vmatprep.subr.bf16.mxu0 %v1582_v22  ;;  %1145 = vmatpush3.bf16.msra.mxu1 %v1593_v38  ;;  %v111_v57 = vld [vmem:[#allocation7 + $0x40] sm:$0xff]  ;;  %v112_v58 = vld [vmem:[#allocation7 + $0x48] sm:$0xff]  ;;  %v1617_v59 = vpack.c.bf16 %v97_v53, %v95_v52  ;;  %v1620_v60 = vpack.c.bf16 %v102_v55, %v100_v54  ;;  %v101_v62 = vld [vmem:[#allocation5 + $0xf0] sm:$0xff] }
  0x58   :  { %1146 = vmatprep.subr.bf16.mxu1 %v1487_v1  ;;  %v99_v61 = vld [vmem:[#allocation5 + $0xe0] sm:$0xff]  ;;  %v1623_v63 = vpack.c.bf16 %v112_v58, %v111_v57  ;;  %v113_v2 = vld [vmem:[#allocation7 + $0x50] sm:$0xff]  ;;  %v114_v3 = vld [vmem:[#allocation7 + $0x58] sm:$0xff] }
  0x59   :  { %v1627_v4 = vpack.c.bf16 %v101_v62, %v99_v61  ;;  %v1631_v6 = vpack.c.bf16 %v114_v3, %v113_v2  ;;  %v115_v7 = vld [vmem:[#allocation7 + $0x60] sm:$0xff]  ;;  %v116_v8 = vld [vmem:[#allocation7 + $0x68] sm:$0xff]  ;;  %v135_v11 = vld [vmem:[#allocation2] sm:$0xff] }
  0x5a   :  { %1123 = vmatpush1.bf16.msra.mxu0 %v1585_v30  ;;  %v1637_v12 = vpack.c.bf16 %v116_v8, %v115_v7  ;;  %v117_v13 = vld [vmem:[#allocation7 + $0x70] sm:$0xff]  ;;  %v118_v14 = vld [vmem:[#allocation7 + $0x78] sm:$0xff]  ;;  %v119_v18 = vld [vmem:[#allocation8] sm:$0xff] }
  0x5b   :  { %1125 = vmatprep.subr.bf16.mxu0 %v1590_v33  ;;  %1148 = vmatpush3.bf16.msra.mxu1 %v1603_v47  ;;  %v1642_v17 = vpack.c.bf16 %v118_v14, %v117_v13  ;;  %v120_v19 = vld [vmem:[#allocation8 + $0x8] sm:$0xff]  ;;  %v121_v20 = vld [vmem:[#allocation8 + $0x10] sm:$0xff]  ;;  %v122_v24 = vld [vmem:[#allocation8 + $0x18] sm:$0xff] }
  0x5c   :  { %1149 = vmatprep.subr.bf16.mxu1 %v1487_v1  ;;  %v1650_v23 = vpack.c.bf16 %v120_v19, %v119_v18  ;;  %v1653_v25 = vpack.c.bf16 %v122_v24, %v121_v20  ;;  %v123_v26 = vld [vmem:[#allocation8 + $0x20] sm:$0xff]  ;;  %v124_v27 = vld [vmem:[#allocation8 + $0x28] sm:$0xff]  ;;  %v125_v29 = vld [vmem:[#allocation8 + $0x30] sm:$0xff] }
  0x5d   :  { %v1657_v28 = vpack.c.bf16 %v124_v27, %v123_v26  ;;  %v126_v32 = vld [vmem:[#allocation8 + $0x38] sm:$0xff]  ;;  %v127_v35 = vld [vmem:[#allocation8 + $0x40] sm:$0xff]  ;;  %v128_v36 = vld [vmem:[#allocation8 + $0x48] sm:$0xff] }
  0x5e   :  { %1127 = vmatpush1.bf16.msra.mxu0 %v1597_v41  ;;  %v1661_v34 = vpack.c.bf16 %v126_v32, %v125_v29  ;;  %v1665_v37 = vpack.c.bf16 %v128_v36, %v127_v35  ;;  %v129_v39 = vld [vmem:[#allocation8 + $0x50] sm:$0xff]  ;;  %v130_v40 = vld [vmem:[#allocation8 + $0x58] sm:$0xff]  ;;  %v131_v44 = vld [vmem:[#allocation8 + $0x60] sm:$0xff] }
  0x5f   :  { %1129 = vmatprep.subr.bf16.mxu0 %v1600_v42  ;;  %1151 = vmatpush3.bf16.msra.mxu1 %v1613_v56  ;;  %v1669_v43 = vpack.c.bf16 %v130_v40, %v129_v39  ;;  %v132_v45 = vld [vmem:[#allocation8 + $0x68] sm:$0xff]  ;;  %v133_v53 = vld [vmem:[#allocation8 + $0x70] sm:$0xff]  ;;  %v134_v54 = vld [vmem:[#allocation8 + $0x78] sm:$0xff] }
  0x60   :  { %1152 = vmatprep.subr.bf16.mxu1 %v1487_v1  ;;  %v1673_v46 = vpack.c.bf16 %v132_v45, %v131_v44  ;;  %v1695_v55 = vpack.c.bf16 %v134_v54, %v133_v53 }
  0x62   :  { %1131 = vmatpush1.bf16.msra.mxu0 %v1607_v50 }
  0x63   :  { %1133 = vmatprep.subr.bf16.mxu0 %v1610_v51  ;;  %1154 = vmatpush3.bf16.msra.mxu1 %v1623_v63 }
  0x64   :  { %1155 = vmatprep.subr.bf16.mxu1 %v1487_v1 }
  0x66   :  { %1135 = vmatpush1.bf16.msra.mxu0 %v1617_v59 }
  0x67   :  { %1137 = vmatprep.subr.bf16.mxu0 %v1620_v60  ;;  %1157 = vmatpush3.bf16.msra.mxu1 %v1631_v6 }
  0x68   :  { %1158 = vmatprep.subr.bf16.mxu1 %v1487_v1 }
  0x6a   :  { %1139 = vmatpush1.bf16.msra.mxu0 %v1627_v4 }
  0x6b   :  { %1164 = vmatprep.subr.bf16.mxu0 %v1487_v1  ;;  %1160 = vmatpush3.bf16.msra.mxu1 %v1637_v12 }
  0x6c   :  { %1161 = vmatprep.subr.bf16.mxu1 %v1487_v1 }
  0x6d   :  { %201 = vmatmul.mubr.f32.vlgmr.msra.gmra.mrb[0].mxu0 %v135_v11 }
  0x6e   :  { %965 = vmatprep.mubr.msk.f32.mxu0 %vm1488_vm0, %v1486_v0  ;;  %1166 = vmatpush3.bf16.msra.mxu0 %v1650_v23 }
  0x6f   :  { %1163 = vmatpush3.bf16.msra.mxu1 %v1642_v17  ;;  %1167 = vmatprep.subr.bf16.mxu0 %v1487_v1 }
  0x70   :  { %1189 = vmatprep.subr.bf16.mxu1 %v1565_v5 }
  0x72   :  { %1169 = vmatpush3.bf16.msra.mxu0 %v1653_v25 }
  0x73   :  { %1170 = vmatprep.subr.bf16.mxu0 %v1487_v1 }
  0x76   :  { %1172 = vmatpush3.bf16.msra.mxu0 %v1657_v28 }
  0x77   :  { %1173 = vmatprep.subr.bf16.mxu0 %v1487_v1 }
  0x7a   :  { %1175 = vmatpush3.bf16.msra.mxu0 %v1661_v34 }
  0x7b   :  { %1176 = vmatprep.subr.bf16.mxu0 %v1487_v1 }
  0x7e   :  { %1178 = vmatpush3.bf16.msra.mxu0 %v1665_v37 }
  0x7f   :  { %1179 = vmatprep.subr.bf16.mxu0 %v1487_v1 }
  0x82   :  { %1181 = vmatpush3.bf16.msra.mxu0 %v1669_v43 }
  0x83   :  { %1182 = vmatprep.subr.bf16.mxu0 %v1487_v1 }
  0x86   :  { %1184 = vmatpush3.bf16.msra.mxu0 %v1673_v46 }
  0x87   :  { %1185 = vmatprep.subr.bf16.mxu0 %v1487_v1 }
  0x8a   :  { %1187 = vmatpush3.bf16.msra.mxu0 %v1695_v55 }
  0x8b   :  { %1220 = vmatprep.subr.bf16.mxu0 %v1487_v1 }
 0x140   :  { %v202_v48 = vpop.f32.mrb[0].mxu0 }
 0x141   :  { %v207_v49 = vmax.f32 %v202_v48, 0.0  ;;  %v204_v52 = vpop.f32.mrb[1].mxu0 }
 0x143   :  { %931 = vmatmul.mubr.f32.vlgmr.msra.gmra.mrb[0].mxu1 %v207_v49 }
 0x144   :  { %1191 = vmatpush1.bf16.msra.mxu1 %v1567_v9  ;;  %414 = vmatprep.mubr.f32.mxu1 %v1486_v0 }
 0x145   :  { %1193 = vmatprep.subr.bf16.mxu1 %v1569_v10 }
 0x148   :  { %1195 = vmatpush1.bf16.msra.mxu1 %v1573_v15 }
 0x149   :  { %1197 = vmatprep.subr.bf16.mxu1 %v1576_v16 }
 0x14c   :  { %1199 = vmatpush1.bf16.msra.mxu1 %v1579_v21 }
 0x14d   :  { %1201 = vmatprep.subr.bf16.mxu1 %v1582_v22 }
 0x150   :  { %1203 = vmatpush1.bf16.msra.mxu1 %v1585_v30 }
 0x151   :  { %1205 = vmatprep.subr.bf16.mxu1 %v1590_v33 }
 0x154   :  { %1207 = vmatpush1.bf16.msra.mxu1 %v1597_v41 }
 0x155   :  { %1209 = vmatprep.subr.bf16.mxu1 %v1600_v42 }
 0x158   :  { %1211 = vmatpush1.bf16.msra.mxu1 %v1607_v50 }
 0x159   :  { %1213 = vmatprep.subr.bf16.mxu1 %v1610_v51 }
 0x15c   :  { %1215 = vmatpush1.bf16.msra.mxu1 %v1617_v59 }
 0x15d   :  { %1217 = vmatprep.subr.bf16.mxu1 %v1620_v60 }
 0x160   :  { %1219 = vmatpush1.bf16.msra.mxu1 %v1627_v4 }
 0x161   :  { %1244 = vmatprep.subr.bf16.mxu1 %v1487_v1 }
 0x216   :  { %v274_v57 = vpop.f32.mrb[0].mxu1 }
 0x217   :  { %v278_v58 = vmax.f32 %v274_v57, 0.0  ;;  %v932_v61 = vpop.f32.mrb[1].mxu1 }
 0x219   :  { %966 = vmatmul.mubr.f32.vlgmr.msra.gmra.mrb[2].mxu0 %v278_v58 }
 0x21a   :  { %1222 = vmatpush3.bf16.msra.mxu0 %v1587_v31  ;;  %1000 = vmatprep.mubr.msk.f32.mxu0 %vm1488_vm0, %v1486_v0 }
 0x21b   :  { %1223 = vmatprep.subr.bf16.mxu0 %v1487_v1 }
 0x21e   :  { %1225 = vmatpush3.bf16.msra.mxu0 %v1593_v38 }
 0x21f   :  { %1226 = vmatprep.subr.bf16.mxu0 %v1487_v1 }
 0x222   :  { %1228 = vmatpush3.bf16.msra.mxu0 %v1603_v47 }
 0x223   :  { %1229 = vmatprep.subr.bf16.mxu0 %v1487_v1 }
 0x226   :  { %1231 = vmatpush3.bf16.msra.mxu0 %v1613_v56 }
 0x227   :  { %1232 = vmatprep.subr.bf16.mxu0 %v1487_v1 }
 0x22a   :  { %1234 = vmatpush3.bf16.msra.mxu0 %v1623_v63 }
 0x22b   :  { %1235 = vmatprep.subr.bf16.mxu0 %v1487_v1 }
 0x22e   :  { %1237 = vmatpush3.bf16.msra.mxu0 %v1631_v6 }
 0x22f   :  { %1238 = vmatprep.subr.bf16.mxu0 %v1487_v1 }
 0x232   :  { %1240 = vmatpush3.bf16.msra.mxu0 %v1637_v12 }
 0x233   :  { %1241 = vmatprep.subr.bf16.mxu0 %v1487_v1 }
 0x236   :  { %1243 = vmatpush3.bf16.msra.mxu0 %v1642_v17 }
 0x237   :  { %1269 = vmatprep.subr.bf16.mxu0 %v1565_v5 }
 0x2ec   :  { %v345_v62 = vpop.f32.mrb[2].mxu0 }
 0x2ed   :  { %v349_v2 = vadd.f32 %v345_v62, %v204_v52  ;;  %v967_v3 = vpop.f32.mrb[3].mxu0 }
 0x2ef   :  { %415 = vmatmul.mubr.f32.vlgmr.msra.gmra.mrb[2].mxu1 %v349_v2 }
 0x2f0   :  { %1246 = vmatpush3.bf16.msra.mxu1 %v1650_v23  ;;  %1035 = vmatprep.mubr.msk.f32.mxu1 %vm1488_vm0, %v1486_v0 }
 0x2f1   :  { %1247 = vmatprep.subr.bf16.mxu1 %v1487_v1 }
 0x2f4   :  { %1249 = vmatpush3.bf16.msra.mxu1 %v1653_v25 }
 0x2f5   :  { %1250 = vmatprep.subr.bf16.mxu1 %v1487_v1 }
 0x2f8   :  { %1252 = vmatpush3.bf16.msra.mxu1 %v1657_v28 }
 0x2f9   :  { %1253 = vmatprep.subr.bf16.mxu1 %v1487_v1 }
 0x2fc   :  { %1255 = vmatpush3.bf16.msra.mxu1 %v1661_v34 }
 0x2fd   :  { %1256 = vmatprep.subr.bf16.mxu1 %v1487_v1 }
 0x300   :  { %1258 = vmatpush3.bf16.msra.mxu1 %v1665_v37 }
 0x301   :  { %1259 = vmatprep.subr.bf16.mxu1 %v1487_v1 }
 0x304   :  { %1261 = vmatpush3.bf16.msra.mxu1 %v1669_v43 }
 0x305   :  { %1262 = vmatprep.subr.bf16.mxu1 %v1487_v1 }
 0x308   :  { %1264 = vmatpush3.bf16.msra.mxu1 %v1673_v46 }
 0x309   :  { %1265 = vmatprep.subr.bf16.mxu1 %v1487_v1 }
 0x30c   :  { %1267 = vmatpush3.bf16.msra.mxu1 %v1695_v55 }
 0x30d   :  { %1300 = vmatprep.subr.bf16.mxu1 %v1487_v1 }
 0x3c2   :  { %v416_v5 = vpop.f32.mrb[2].mxu1 }
 0x3c3   :  { %v421_v7 = vmax.f32 %v416_v5, 0.0  ;;  %v418_v8 = vpop.f32.mrb[3].mxu1 }
 0x3c5   :  { %1001 = vmatmul.mubr.f32.vlgmr.msra.gmra.mrb[4].mxu0 %v421_v7 }
 0x3c6   :  { %1271 = vmatpush1.bf16.msra.mxu0 %v1567_v9  ;;  %628 = vmatprep.mubr.f32.mxu0 %v1486_v0 }
 0x3c7   :  { %1273 = vmatprep.subr.bf16.mxu0 %v1569_v10 }
 0x3ca   :  { %1275 = vmatpush1.bf16.msra.mxu0 %v1573_v15 }
 0x3cb   :  { %1277 = vmatprep.subr.bf16.mxu0 %v1576_v16 }
 0x3ce   :  { %1279 = vmatpush1.bf16.msra.mxu0 %v1579_v21 }
 0x3cf   :  { %1281 = vmatprep.subr.bf16.mxu0 %v1582_v22 }
 0x3d2   :  { %1283 = vmatpush1.bf16.msra.mxu0 %v1585_v30 }
 0x3d3   :  { %1285 = vmatprep.subr.bf16.mxu0 %v1590_v33 }
 0x3d6   :  { %1287 = vmatpush1.bf16.msra.mxu0 %v1597_v41 }
 0x3d7   :  { %1289 = vmatprep.subr.bf16.mxu0 %v1600_v42 }
 0x3da   :  { %1291 = vmatpush1.bf16.msra.mxu0 %v1607_v50 }
 0x3db   :  { %1293 = vmatprep.subr.bf16.mxu0 %v1610_v51 }
 0x3de   :  { %1295 = vmatpush1.bf16.msra.mxu0 %v1617_v59 }
 0x3df   :  { %1297 = vmatprep.subr.bf16.mxu0 %v1620_v60 }
 0x3e2   :  { %1299 = vmatpush1.bf16.msra.mxu0 %v1627_v4 }
 0x3e3   :  { %1324 = vmatprep.subr.bf16.mxu0 %v1487_v1 }
 0x498   :  { %v488_v9 = vpop.f32.mrb[4].mxu0 }
 0x499   :  { %v492_v10 = vmax.f32 %v488_v9, 0.0  ;;  %v1002_v15 = vpop.f32.mrb[5].mxu0 }
 0x49b   :  { %1036 = vmatmul.mubr.f32.vlgmr.msra.gmra.mrb[4].mxu1 %v492_v10 }
 0x49c   :  { %1302 = vmatpush3.bf16.msra.mxu1 %v1587_v31  ;;  %1070 = vmatprep.mubr.msk.f32.mxu1 %vm1488_vm0, %v1486_v0 }
 0x49d   :  { %1303 = vmatprep.subr.bf16.mxu1 %v1487_v1 }
 0x4a0   :  { %1305 = vmatpush3.bf16.msra.mxu1 %v1593_v38 }
 0x4a1   :  { %1306 = vmatprep.subr.bf16.mxu1 %v1487_v1 }
 0x4a4   :  { %1308 = vmatpush3.bf16.msra.mxu1 %v1603_v47 }
 0x4a5   :  { %1309 = vmatprep.subr.bf16.mxu1 %v1487_v1 }
 0x4a8   :  { %1311 = vmatpush3.bf16.msra.mxu1 %v1613_v56 }
 0x4a9   :  { %1312 = vmatprep.subr.bf16.mxu1 %v1487_v1 }
 0x4ac   :  { %1314 = vmatpush3.bf16.msra.mxu1 %v1623_v63 }
 0x4ad   :  { %1315 = vmatprep.subr.bf16.mxu1 %v1487_v1 }
 0x4b0   :  { %1317 = vmatpush3.bf16.msra.mxu1 %v1631_v6 }
 0x4b1   :  { %1318 = vmatprep.subr.bf16.mxu1 %v1487_v1 }
 0x4b4   :  { %1320 = vmatpush3.bf16.msra.mxu1 %v1637_v12 }
 0x4b5   :  { %1321 = vmatprep.subr.bf16.mxu1 %v1487_v1 }
 0x4b8   :  { %1323 = vmatpush3.bf16.msra.mxu1 %v1642_v17 }
 0x56e   :  { %v559_v16 = vpop.f32.mrb[4].mxu1 }
 0x56f   :  { %v563_v21 = vadd.f32 %v559_v16, %v418_v8  ;;  %v1037_v22 = vpop.f32.mrb[5].mxu1 }
 0x571   :  { %629 = vmatmul.mubr.f32.vlgmr.msra.gmra.mrb[6].mxu0 %v563_v21 }
 0x572   :  { %1326 = vmatpush3.bf16.msra.mxu0 %v1650_v23  ;;  %1105 = vmatprep.mubr.msk.f32.mxu0 %vm1488_vm0, %v1486_v0 }
 0x573   :  { %1327 = vmatprep.subr.bf16.mxu0 %v1487_v1 }
 0x576   :  { %1329 = vmatpush3.bf16.msra.mxu0 %v1653_v25 }
 0x577   :  { %1330 = vmatprep.subr.bf16.mxu0 %v1487_v1 }
 0x57a   :  { %1332 = vmatpush3.bf16.msra.mxu0 %v1657_v28 }
 0x57b   :  { %1333 = vmatprep.subr.bf16.mxu0 %v1487_v1 }
 0x57e   :  { %1335 = vmatpush3.bf16.msra.mxu0 %v1661_v34 }
 0x57f   :  { %1336 = vmatprep.subr.bf16.mxu0 %v1487_v1 }
 0x582   :  { %1338 = vmatpush3.bf16.msra.mxu0 %v1665_v37 }
 0x583   :  { %1339 = vmatprep.subr.bf16.mxu0 %v1487_v1 }
 0x586   :  { %1341 = vmatpush3.bf16.msra.mxu0 %v1669_v43 }
 0x587   :  { %1342 = vmatprep.subr.bf16.mxu0 %v1487_v1 }
 0x58a   :  { %1344 = vmatpush3.bf16.msra.mxu0 %v1673_v46 }
 0x58b   :  { %1345 = vmatprep.subr.bf16.mxu0 %v1487_v1 }
 0x58e   :  { %1347 = vmatpush3.bf16.msra.mxu0 %v1695_v55 }
 0x644   :  { %v630_v0 = vpop.f32.mrb[6].mxu0 }
 0x645   :  { %v635_v30 = vmax.f32 %v630_v0, 0.0  ;;  %v632_v31 = vpop.f32.mrb[7].mxu0 }
 0x647   :  { %1071 = vmatmul.mubr.f32.vlgmr.msra.gmra.mrb[6].mxu1 %v635_v30 }
 0x71a   :  { %v702_v33 = vpop.f32.mrb[6].mxu1 }
 0x71b   :  { %v706_v38 = vmax.f32 %v702_v33, 0.0  ;;  %v1072_v41 = vpop.f32.mrb[7].mxu1 }
 0x71d   :  { %1106 = vmatmul.mubr.f32.vlgmr.msra.gmra.mrb[8].mxu0 %v706_v38 }
 0x7f0   :  { %v773_v42 = vpop.f32.mrb[8].mxu0 }
 0x7f1   :  { %v777_v47 = vadd.f32 %v773_v42, %v632_v31  ;;  %v1107_v50 = vpop.f32.mrb[9].mxu0 }
 0x7f3   :  { %778 = vst [vmem:[#allocation10] sm:$0xff] %v777_v47 }
 0x7f4   :  { %1459 = shalt.err (!%p1456_p8)
}
 0x7f5   :  { %s1460_s15 = scalar_lea.hbm %s1802_s4, 128 }
 0x7f6   :  { %p1461_p9 = scmp.ne.s32.totalorder %s1802_s4, %s1460_s15  ;;  %p1464_p10 = scmp.lt.u32.totalorder %s1460_s15, %s1802_s4 }
 0x7f8   :  { %p1466_p11 = pnand %p1464_p10, %p1461_p9 }
 0x7fa   :  { %1469 = shalt.err (!%p1466_p11)
}
 0x7fb   :  { %788 = dma.vmem_to_hbm [thread:$0]  %s786_s12, 128, %s1802_s4, [#allocation4]  }
 0x7fc   :  { %1476 = dma.done.wait [#allocation4], 128  }
 0x7fd   :  { %1477 = vsyncadd [#allocation4], 4294967168 }
 0x7fe   :  { %792 = vsyncpa [#allocation3], 1 }
 0x7ff   :  { %793 = vsyncpa [#allocation6], 1 }
 0x800   :  { %794 = vsyncpa [#allocation9], 1 }
 0x801   :  { %795 = vsyncpa [#allocation4], 1 }

</bundles_post_ra>
